<compile_context>
chip_gen: v6e
topology: v6e:2x2x1
jax: 0.10.0
libtpu: 0.0.40
codegen_flags: <defaults>
</compile_context>

<pallas_src>
import math

import jax
import jax.numpy as jnp
from jax.experimental import pallas as pl
from jax.experimental.pallas import tpu as pltpu


NEG = -1e30  # finite "-inf" sentinel: NEG - NEG == 0, exp(NEG - finite) == 0


def _round_up(a, b):
    return ((a + b - 1) // b) * b


# ----------------------------------------------------------------------------
# Fused single-pass kernel: gate nets + online segment softmax stats +
# rescaled attention pooling + all per-objective MLP heads
# ----------------------------------------------------------------------------
def _make_fused_kernel(n_obj, n_lin):
    n_fixed = 8  # x, batch_col, batch_row, pmask, w1, b1, w2, b2

    def kernel(*refs):
        x_ref, bcol_ref, brow_ref, pm_ref = refs[0:4]
        w1_ref, b1_ref, w2_ref, b2_ref = refs[4:8]
        pos = n_fixed
        head_refs = []
        for _ in range(n_obj):
            layers = []
            for _ in range(n_lin):
                layers.append((refs[pos], refs[pos + 1]))
                pos += 2
            head_refs.append(layers)
        score_ref = refs[pos]                      # [TN, 2] raw gate scores
        m_ref = refs[pos + 1]                      # [2, G] running max (P, pseudo)
        l_ref = refs[pos + 2]                      # [2, G] running sum
        out_refs = refs[pos + 3: pos + 3 + n_obj]  # per-objective head outputs
        pool_p_ref, pool_b_ref = refs[pos + 3 + n_obj:]

        f32 = jnp.float32
        bf16 = jnp.bfloat16
        t = pl.program_id(0)
        nt = pl.num_programs(0)

        tn_, d = x_ref.shape
        g = m_ref.shape[1]

        @pl.when(t == 0)
        def _init():
            m_ref[...] = jnp.full(m_ref.shape, NEG, f32)
            l_ref[...] = jnp.zeros(l_ref.shape, f32)
            pool_p_ref[...] = jnp.zeros(pool_p_ref.shape, f32)
            pool_b_ref[...] = jnp.zeros(pool_b_ref.shape, f32)

        x = x_ref[...]                               # [TN, D]  bf16
        bcol = bcol_ref[...]                         # [TN, 1]  int32 (pad rows = -1)
        brow = brow_ref[...]                         # [1, TN]  int32
        pm = pm_ref[...]                             # [TN, 1]  f32 pseudo-node mask
        is_pseudo = pm > 0.0

        # in-kernel one-hots from int32 batch ids (no HBM one-hot streaming)
        lane_g = jax.lax.broadcasted_iota(jnp.int32, (tn_, g), 1)
        oh = bcol == lane_g                          # [TN, G] node-major, bool
        sub_g = jax.lax.broadcasted_iota(jnp.int32, (g, tn_), 0)
        oht = (sub_g == brow).astype(bf16)           # [G, TN] graph-major (MXU pooling)

        # fused gate networks (P and pseudo_B): Linear -> ReLU -> Linear
        h = jnp.dot(x, w1_ref[...], preferred_element_type=f32) + b1_ref[...]
        h = jnp.maximum(h, 0.0)                      # [TN, 2H]
        gate = jnp.dot(h.astype(bf16), w2_ref[...],
                       preferred_element_type=f32) + b2_ref[...]     # [TN, 2]
        score_ref[...] = gate                        # single lane-dense store
        g_p = gate[:, 0:1]                           # P-attention scores
        g_b = gate[:, 1:2]                           # pseudo-attention scores

        # ---- flash-style online per-graph max / sum ------------------------
        msk_p = jnp.where(oh, g_p, NEG)                               # [TN, G]
        msk_b = jnp.where(oh & is_pseudo, g_b, NEG)
        mp_old = m_ref[0:1, :]
        mb_old = m_ref[1:2, :]
        mp_new = jnp.maximum(mp_old, jnp.max(msk_p, axis=0, keepdims=True))
        mb_new = jnp.maximum(mb_old, jnp.max(msk_b, axis=0, keepdims=True))
        alpha_p = jnp.exp(mp_old - mp_new)                            # [1, G]
        alpha_b = jnp.exp(mb_old - mb_new)
        e_p = jnp.where(oh, jnp.exp(msk_p - mp_new), 0.0)             # [TN, G]
        e_b = jnp.where(oh & is_pseudo, jnp.exp(msk_b - mb_new), 0.0)
        l_ref[0:1, :] = l_ref[0:1, :] * alpha_p + jnp.sum(e_p, axis=0, keepdims=True)
        l_ref[1:2, :] = l_ref[1:2, :] * alpha_b + jnp.sum(e_b, axis=0, keepdims=True)
        m_ref[0:1, :] = mp_new
        m_ref[1:2, :] = mb_new

        # per-node unnormalized weights (exact gather: one non-zero per row)
        ew_p = jnp.sum(e_p, axis=1, keepdims=True)                    # [TN, 1]
        ew_b = jnp.sum(e_b, axis=1, keepdims=True)

        # [1, G] row -> [G, 1] column without a transpose (tiny select+reduce)
        rg = jax.lax.broadcasted_iota(jnp.int32, (g, g), 0)
        cg = jax.lax.broadcasted_iota(jnp.int32, (g, g), 1)
        eye = rg == cg

        def to_col(row):
            return jnp.sum(jnp.where(eye, row, 0.0), axis=1, keepdims=True)

        # rescaled, un-normalized attention pooling (MXU-native)
        xf = x.astype(f32)
        wp = (ew_p * xf).astype(bf16)                                 # [TN, D]
        wb = (ew_b * xf).astype(bf16)
        pool_p_ref[...] = (pool_p_ref[...] * to_col(alpha_p)
                           + jnp.dot(oht, wp, preferred_element_type=f32))
        pool_b_ref[...] = (pool_b_ref[...] * to_col(alpha_b)
                           + jnp.dot(oht, wb, preferred_element_type=f32))

        @pl.when(t == nt - 1)
        def _heads():
            # graphs without pseudo nodes get a zero pseudo contribution
            lp_col = jnp.maximum(to_col(l_ref[0:1, :]), 1e-16)
            lb_col = jnp.maximum(to_col(l_ref[1:2, :]), 1e-16)
            pooled = pool_p_ref[...] / lp_col + pool_b_ref[...] / lb_col   # [G, D]
            for oi in range(n_obj):
                hcur = pooled
                for li in range(n_lin):
                    w_r, b_r = head_refs[oi][li]
                    hcur = jnp.dot(hcur, w_r[...],
                                   preferred_element_type=f32) + b_r[...]
                    if li != n_lin - 1:
                        hcur = jnp.maximum(hcur, 0.0)
                out_refs[oi][...] = hcur

    return kernel


# ----------------------------------------------------------------------------
# Wrapper: packs the fused gate params, one pallas_call, per-node softmax
# normalization of the attention from the kernel's (scores, m, l) outputs.
# ----------------------------------------------------------------------------
def multi_attension_mlp_forward(x, batch, x_pseudonids, params, objectives,
                                num_graphs, *, tile_nodes=1024):
    assert tile_nodes % 128 == 0
    n, d = x.shape
    g = int(num_graphs)

    # ---- node tiling / padding (N padded to a multiple of the tile) --------
    if n <= tile_nodes:
        tn = max(8, _round_up(n, 8))
    else:
        tn = tile_nodes
    n_pad = _round_up(n, tn)
    nt = n_pad // tn
    pad = n_pad - n

    # x streamed as bf16: every MXU consumer (gate matmul, pooling matmul) is
    # bf16 anyway, so this halves HBM traffic at essentially no extra
    # precision cost vs. the previous version (minor delta vs f32 PyTorch).
    x_p = jnp.pad(x.astype(jnp.float32), ((0, pad), (0, 0))).astype(jnp.bfloat16)
    batch_p = jnp.pad(batch.astype(jnp.int32), (0, pad), constant_values=-1)
    bcol = batch_p[:, None]                      # [Np, 1] int32
    brow = batch_p[None, :]                      # [1, Np] int32
    pmask = jnp.zeros((n,), jnp.float32)
    if x_pseudonids is not None:
        # NOTE: assumes x_pseudonids holds valid node indices (no -1 sentinels)
        pmask = pmask.at[x_pseudonids].set(1.0)
    pmask_p = jnp.pad(pmask, (0, pad))[:, None]  # [Np, 1]

    # ---- fuse the two gate networks into one wide network ------------------
    gp = params['gate']
    hg = gp['wp1'].shape[1]
    w1f = jnp.concatenate([gp['wp1'], gp['wb1']], axis=1).astype(jnp.bfloat16)
    b1f = jnp.concatenate([gp['bp1'], gp['bb1']], axis=1).astype(jnp.float32)
    w2f = jnp.zeros((2 * hg, 2), jnp.float32)
    w2f = w2f.at[:hg, 0:1].set(gp['wp2'])
    w2f = w2f.at[hg:, 1:2].set(gp['wb2'])
    w2f = w2f.astype(jnp.bfloat16)
    b2f = jnp.concatenate([gp['bp2'], gp['bb2']], axis=1).astype(jnp.float32)

    heads = [params['heads'][obj] for obj in objectives]
    n_obj = len(objectives)
    n_lin = len(heads[0])
    assert all(len(hl) == n_lin for hl in heads)
    out_dim = heads[0][-1][0].shape[1]

    def fullspec(shape):
        return pl.BlockSpec(shape, lambda t: (0,) * len(shape))

    in_specs = [
        pl.BlockSpec((tn, d), lambda t: (t, 0)),   # x (bf16)
        pl.BlockSpec((tn, 1), lambda t: (t, 0)),   # batch ids, node-major column
        pl.BlockSpec((1, tn), lambda t: (0, t)),   # batch ids, lane-major row
        pl.BlockSpec((tn, 1), lambda t: (t, 0)),   # pseudo-node mask
        fullspec(w1f.shape), fullspec(b1f.shape),
        fullspec(w2f.shape), fullspec(b2f.shape),
    ]
    inputs = [x_p, bcol, brow, pmask_p, w1f, b1f, w2f, b2f]
    for hl in heads:
        for w, b in hl:
            inputs += [w, b]
            in_specs += [fullspec(w.shape), fullspec(b.shape)]

    # Outputs: raw gate scores [Np,2], final per-graph max [2,G] and sum [2,G],
    # plus one [G, out_dim] per objective.
    out_shape = [jax.ShapeDtypeStruct((n_pad, 2), jnp.float32),
                 jax.ShapeDtypeStruct((2, g), jnp.float32),
                 jax.ShapeDtypeStruct((2, g), jnp.float32)]
    out_specs = [pl.BlockSpec((tn, 2), lambda t: (t, 0)),
                 fullspec((2, g)),
                 fullspec((2, g))]
    for _ in range(n_obj):
        out_shape.append(jax.ShapeDtypeStruct((g, out_dim), jnp.float32))
        out_specs.append(fullspec((g, out_dim)))

    gate_flops = 2 * n_pad * d * (2 * hg) + 2 * n_pad * (2 * hg) * 2
    pool_flops = 2 * 2 * n_pad * g * d
    head_flops = sum(2 * g * w.shape[0] * w.shape[1]
                     for hl in heads for w, _ in hl)
    cost = pl.CostEstimate(
        flops=int(gate_flops + pool_flops + head_flops),
        transcendentals=int(6 * n_pad),
        bytes_accessed=int(x_p.size * 2 + 3 * n_pad * 4 + n_pad * 2 * 4
                           + 4 * g * 4 + n_obj * g * out_dim * 4),
    )

    kernel = _make_fused_kernel(n_obj, n_lin)
    result = pl.pallas_call(
        kernel,
        grid=(nt,),                               # single node-tile sweep
        in_specs=in_specs,
        out_specs=tuple(out_specs),
        out_shape=tuple(out_shape),
        scratch_shapes=[
            pltpu.VMEM((g, d), jnp.float32),      # un-normalized P pool
            pltpu.VMEM((g, d), jnp.float32),      # un-normalized pseudo pool
        ],
        compiler_params=pltpu.CompilerParams(
            dimension_semantics=("arbitrary",),
            vmem_limit_bytes=32 * 1024 * 1024),
        cost_estimate=cost,
    )(*inputs)

    # ---- cheap per-node softmax normalization in the wrapper ----------------
    scores = result[0][:n]
    m_fin, l_fin = result[1], result[2]
    batch_i = batch.astype(jnp.int32)
    g_p = scores[:, 0]
    g_b = scores[:, 1]
    m_p = jnp.take(m_fin[0], batch_i)
    m_b = jnp.take(m_fin[1], batch_i)
    l_p = jnp.take(l_fin[0], batch_i)
    l_b = jnp.take(l_fin[1], batch_i)
    is_ps = pmask > 0.0
    att_p = jnp.exp(g_p - m_p) / jnp.maximum(l_p, 1e-16)
    # graphs without pseudo nodes silently get att_b == 0 (same behaviour as
    # the previous version of this kernel)
    att_b = (jnp.where(is_ps, jnp.exp(jnp.where(is_ps, g_b - m_b, 0.0)), 0.0)
             / jnp.maximum(l_b, 1e-16))
    att_p = att_p[:, None]
    att_b = att_b[:, None]

    out_MLP, att_dict = {}, {}
    for i, obj in enumerate(objectives):
        out_MLP[obj] = result[3 + i]
        # identical arrays for every objective (gate nets are shared weights)
        att_dict[obj] = {'pseudo': att_b, 'P': att_p}
    return out_MLP, att_dict


# ----------------------------------------------------------------------------
# Deterministic parameter construction
# ----------------------------------------------------------------------------
def _xavier_normal(key, fan_in, fan_out, gain):
    std = gain * math.sqrt(2.0 / (fan_in + fan_out))
    return std * jax.random.normal(key, (fan_in, fan_out), jnp.float32)


def init_params(key, input_dim, hidden_channels, output_dim, objectives,
                gate_hidden=64):
    layer_channels = [input_dim] + list(hidden_channels) + [output_dim]
    relu_gain = math.sqrt(2.0)
    keys = iter(jax.random.split(key, 64))

    # Two gate networks: Sequential(Linear(64, 64), ReLU(), Linear(64, 1))
    gate = {
        'wp1': _xavier_normal(next(keys), input_dim, gate_hidden, 1.0),
        'bp1': jnp.zeros((1, gate_hidden), jnp.float32),
        'wp2': _xavier_normal(next(keys), gate_hidden, 1, 1.0),
        'bp2': jnp.zeros((1, 1), jnp.float32),
        'wb1': _xavier_normal(next(keys), input_dim, gate_hidden, 1.0),
        'bb1': jnp.zeros((1, gate_hidden), jnp.float32),
        'wb2': _xavier_normal(next(keys), gate_hidden, 1, 1.0),
        'bb2': jnp.zeros((1, 1), jnp.float32),
    }

    heads = {}
    for obj in objectives:
        lin = []
        for i in range(len(layer_channels) - 1):
            fi, fo = layer_channels[i], layer_channels[i + 1]
            w = _xavier_normal(next(keys), fi, fo, relu_gain)  # xavier, relu gain
            b = jnp.zeros((1, fo), jnp.float32)
            lin.append((w, b))
        heads[obj] = lin

    return {'gate': gate, 'heads': heads}


# ----------------------------------------------------------------------------
if __name__ == "__main__":
    key = jax.random.PRNGKey(0)
    k_x, k_p = jax.random.split(key)

    input_dim = 64          # must match gate_nn Linear(64, ...)
    hidden_channels = [32]
    output_dim = 8
    objectives = ['latency', 'area']

    N, G = 16, 2            # 16 nodes, 2 graphs in the batch
    x = jax.random.normal(k_x, (N, input_dim), jnp.float32)
    batch = jnp.array([0] * 8 + [1] * 8, dtype=jnp.int32)            # node -> graph
    x_pseudonids = jnp.array([0, 3, 5, 8, 11, 14], dtype=jnp.int32)  # pseudo nodes

    params = init_params(k_p, input_dim, hidden_channels, output_dim, objectives)

    out_MLP, att_dict = multi_attension_mlp_forward(
        x, batch, x_pseudonids, params, objectives, num_graphs=G)

    jax.block_until_ready(out_MLP)
    jax.block_until_ready(att_dict)

    # sanity checks: shapes + finiteness + per-graph softmax normalisation
    for obj in objectives:
        assert out_MLP[obj].shape == (G, output_dim)
        assert att_dict[obj]['P'].shape == (N, 1)
        assert att_dict[obj]['pseudo'].shape == (N, 1)
        assert bool(jnp.all(jnp.isfinite(out_MLP[obj])))

    att_p = att_dict[objectives[0]]['P'][:, 0]
    att_b = att_dict[objectives[0]]['pseudo'][:, 0]
    sum_p = jnp.zeros((G,), jnp.float32).at[batch].add(att_p)
    sum_b = jnp.zeros((G,), jnp.float32).at[batch].add(att_b)
    assert float(jnp.max(jnp.abs(sum_p - 1.0))) < 1e-3
    assert float(jnp.max(jnp.abs(sum_b - 1.0))) < 1e-3

    print("KERNEL_OK")
</pallas_src>

<mosaic_0001>
module attributes {stable_mosaic.version = 11 : i64} {
  func.func @kernel(%arg0: i32, %arg1: memref<16x64xbf16, #tpu.memory_space<vmem>>, %arg2: memref<16x1xi32, #tpu.memory_space<vmem>>, %arg3: memref<1x16xi32, #tpu.memory_space<vmem>>, %arg4: memref<16x1xf32, #tpu.memory_space<vmem>>, %arg5: memref<64x128xbf16, #tpu.memory_space<vmem>>, %arg6: memref<1x128xf32, #tpu.memory_space<vmem>>, %arg7: memref<128x2xbf16, #tpu.memory_space<vmem>>, %arg8: memref<1x2xf32, #tpu.memory_space<vmem>>, %arg9: memref<64x32xf32, #tpu.memory_space<vmem>>, %arg10: memref<1x32xf32, #tpu.memory_space<vmem>>, %arg11: memref<32x8xf32, #tpu.memory_space<vmem>>, %arg12: memref<1x8xf32, #tpu.memory_space<vmem>>, %arg13: memref<64x32xf32, #tpu.memory_space<vmem>>, %arg14: memref<1x32xf32, #tpu.memory_space<vmem>>, %arg15: memref<32x8xf32, #tpu.memory_space<vmem>>, %arg16: memref<1x8xf32, #tpu.memory_space<vmem>>, %arg17: memref<16x2xf32, #tpu.memory_space<vmem>>, %arg18: memref<2x2xf32, #tpu.memory_space<vmem>>, %arg19: memref<2x2xf32, #tpu.memory_space<vmem>>, %arg20: memref<2x8xf32, #tpu.memory_space<vmem>>, %arg21: memref<2x8xf32, #tpu.memory_space<vmem>>, %arg22: memref<2x64xf32, #tpu.memory_space<vmem>>, %arg23: memref<2x64xf32, #tpu.memory_space<vmem>>) attributes {dimension_semantics = [#tpu.dimension_semantics<arbitrary>], iteration_bounds = array<i64: 1>, scalar_prefetch = 0 : i64, scratch_operands = 2 : i64, tpu.core_type = #tpu.core_type<tc>, window_params = [{transform_indices = @transform_0, window_bounds = array<i64: 16, 64>}, {transform_indices = @transform_1, window_bounds = array<i64: 16, 1>}, {transform_indices = @transform_2, window_bounds = array<i64: 1, 16>}, {transform_indices = @transform_3, window_bounds = array<i64: 16, 1>}, {pipeline_mode = #tpu.pipeline_mode<synchronous>, transform_indices = @transform_4, window_bounds = array<i64: 64, 128>}, {pipeline_mode = #tpu.pipeline_mode<synchronous>, transform_indices = @transform_5, window_bounds = array<i64: 1, 128>}, {pipeline_mode = #tpu.pipeline_mode<synchronous>, transform_indices = @transform_6, window_bounds = array<i64: 128, 2>}, {pipeline_mode = #tpu.pipeline_mode<synchronous>, transform_indices = @transform_7, window_bounds = array<i64: 1, 2>}, {pipeline_mode = #tpu.pipeline_mode<synchronous>, transform_indices = @transform_8, window_bounds = array<i64: 64, 32>}, {pipeline_mode = #tpu.pipeline_mode<synchronous>, transform_indices = @transform_9, window_bounds = array<i64: 1, 32>}, {pipeline_mode = #tpu.pipeline_mode<synchronous>, transform_indices = @transform_10, window_bounds = array<i64: 32, 8>}, {pipeline_mode = #tpu.pipeline_mode<synchronous>, transform_indices = @transform_11, window_bounds = array<i64: 1, 8>}, {pipeline_mode = #tpu.pipeline_mode<synchronous>, transform_indices = @transform_12, window_bounds = array<i64: 64, 32>}, {pipeline_mode = #tpu.pipeline_mode<synchronous>, transform_indices = @transform_13, window_bounds = array<i64: 1, 32>}, {pipeline_mode = #tpu.pipeline_mode<synchronous>, transform_indices = @transform_14, window_bounds = array<i64: 32, 8>}, {pipeline_mode = #tpu.pipeline_mode<synchronous>, transform_indices = @transform_15, window_bounds = array<i64: 1, 8>}, {transform_indices = @transform_16, window_bounds = array<i64: 16, 2>}, {pipeline_mode = #tpu.pipeline_mode<synchronous>, transform_indices = @transform_17, window_bounds = array<i64: 2, 2>}, {pipeline_mode = #tpu.pipeline_mode<synchronous>, transform_indices = @transform_18, window_bounds = array<i64: 2, 2>}, {pipeline_mode = #tpu.pipeline_mode<synchronous>, transform_indices = @transform_19, window_bounds = array<i64: 2, 8>}, {pipeline_mode = #tpu.pipeline_mode<synchronous>, transform_indices = @transform_20, window_bounds = array<i64: 2, 8>}]} {
    %c0_i32 = arith.constant 0 : i32
    %0 = arith.cmpi eq, %arg0, %c0_i32 : i32
    %1 = arith.extui %0 : i1 to i32
    %c0_i32_0 = arith.constant 0 : i32
    %2 = arith.cmpi ne, %1, %c0_i32_0 : i32
    scf.if %2 {
      %cst_62 = arith.constant -1.000000e+30 : f32
      %123 = vector.broadcast %cst_62 : f32 to vector<2x2xf32>
      %c0_63 = arith.constant 0 : index
      %c0_64 = arith.constant 0 : index
      %124 = vector.load %arg18[%c0_63, %c0_64] : memref<2x2xf32, #tpu.memory_space<vmem>>, vector<2x2xf32>
      tpu.vector_store %arg18[%c0_63, %c0_64], %123 {strides = array<i32>} : memref<2x2xf32, #tpu.memory_space<vmem>>, vector<2x2xf32>,
      %cst_65 = arith.constant 0.000000e+00 : f32
      %125 = vector.broadcast %cst_65 : f32 to vector<2x2xf32>
      %c0_66 = arith.constant 0 : index
      %c0_67 = arith.constant 0 : index
      %126 = vector.load %arg19[%c0_66, %c0_67] : memref<2x2xf32, #tpu.memory_space<vmem>>, vector<2x2xf32>
      tpu.vector_store %arg19[%c0_66, %c0_67], %125 {strides = array<i32>} : memref<2x2xf32, #tpu.memory_space<vmem>>, vector<2x2xf32>,
      %cst_68 = arith.constant 0.000000e+00 : f32
      %127 = vector.broadcast %cst_68 : f32 to vector<2x64xf32>
      %c0_69 = arith.constant 0 : index
      %c0_70 = arith.constant 0 : index
      %128 = vector.load %arg22[%c0_69, %c0_70] : memref<2x64xf32, #tpu.memory_space<vmem>>, vector<2x64xf32>
      tpu.vector_store %arg22[%c0_69, %c0_70], %127 {strides = array<i32>} : memref<2x64xf32, #tpu.memory_space<vmem>>, vector<2x64xf32>,
      %cst_71 = arith.constant 0.000000e+00 : f32
      %129 = vector.broadcast %cst_71 : f32 to vector<2x64xf32>
      %c0_72 = arith.constant 0 : index
      %c0_73 = arith.constant 0 : index
      %130 = vector.load %arg23[%c0_72, %c0_73] : memref<2x64xf32, #tpu.memory_space<vmem>>, vector<2x64xf32>
      tpu.vector_store %arg23[%c0_72, %c0_73], %129 {strides = array<i32>} : memref<2x64xf32, #tpu.memory_space<vmem>>, vector<2x64xf32>,
    } else {
    }
    %c0 = arith.constant 0 : index
    %c0_1 = arith.constant 0 : index
    %3 = vector.load %arg1[%c0, %c0_1] : memref<16x64xbf16, #tpu.memory_space<vmem>>, vector<16x64xbf16>
    %c0_2 = arith.constant 0 : index
    %c0_3 = arith.constant 0 : index
    %4 = vector.load %arg2[%c0_2, %c0_3] : memref<16x1xi32, #tpu.memory_space<vmem>>, vector<16x1xi32>
    %c0_4 = arith.constant 0 : index
    %c0_5 = arith.constant 0 : index
    %5 = vector.load %arg3[%c0_4, %c0_5] : memref<1x16xi32, #tpu.memory_space<vmem>>, vector<1x16xi32>
    %c0_6 = arith.constant 0 : index
    %c0_7 = arith.constant 0 : index
    %6 = vector.load %arg4[%c0_6, %c0_7] : memref<16x1xf32, #tpu.memory_space<vmem>>, vector<16x1xf32>
    %cst = arith.constant 0.000000e+00 : f32
    %7 = vector.broadcast %cst : f32 to vector<16x1xf32>
    %8 = arith.cmpf ogt, %6, %7 : vector<16x1xf32>
    %9 = tpu.iota {dimensions = array<i32: 1>} : vector<16x2xi32>
    %10 = vector.broadcast %4 : vector<16x1xi32> to vector<16x2xi32>
    %11 = arith.cmpi eq, %10, %9 : vector<16x2xi32>
    %12 = tpu.iota {dimensions = array<i32: 0>} : vector<2x16xi32>
    %13 = vector.broadcast %5 : vector<1x16xi32> to vector<2x16xi32>
    %14 = arith.cmpi eq, %12, %13 : vector<2x16xi32>
    %15 = arith.extui %14 : vector<2x16xi1> to vector<2x16xi32>
    %16 = arith.sitofp %15 : vector<2x16xi32> to vector<2x16xf32>
    %17 = arith.truncf %16 : vector<2x16xf32> to vector<2x16xbf16>
    %c0_8 = arith.constant 0 : index
    %c0_9 = arith.constant 0 : index
    %18 = vector.load %arg5[%c0_8, %c0_9] : memref<64x128xbf16, #tpu.memory_space<vmem>>, vector<64x128xbf16>
    %cst_10 = arith.constant dense<0.000000e+00> : vector<16x128xf32>
    %19 = tpu.matmul %3, %18, %cst_10 {dimension_numbers = #tpu.dot_dimension_numbers<[1], [0], [0], [1], [0, 0, 1, 1], [], []>} : vector<16x64xbf16>, vector<64x128xbf16>, vector<16x128xf32> -> vector<16x128xf32>
    %c0_11 = arith.constant 0 : index
    %c0_12 = arith.constant 0 : index
    %20 = vector.load %arg6[%c0_11, %c0_12] : memref<1x128xf32, #tpu.memory_space<vmem>>, vector<1x128xf32>
    %21 = vector.broadcast %20 : vector<1x128xf32> to vector<16x128xf32>
    %22 = arith.addf %19, %21 : vector<16x128xf32>
    %cst_13 = arith.constant 0.000000e+00 : f32
    %23 = vector.broadcast %cst_13 : f32 to vector<16x128xf32>
    %24 = arith.maximumf %22, %23 : vector<16x128xf32>
    %25 = arith.truncf %24 : vector<16x128xf32> to vector<16x128xbf16>
    %c0_14 = arith.constant 0 : index
    %c0_15 = arith.constant 0 : index
    %26 = vector.load %arg7[%c0_14, %c0_15] : memref<128x2xbf16, #tpu.memory_space<vmem>>, vector<128x2xbf16>
    %cst_16 = arith.constant dense<0.000000e+00> : vector<16x2xf32>
    %27 = tpu.matmul %25, %26, %cst_16 {dimension_numbers = #tpu.dot_dimension_numbers<[1], [0], [0], [1], [0, 0, 1, 1], [], []>} : vector<16x128xbf16>, vector<128x2xbf16>, vector<16x2xf32> -> vector<16x2xf32>
    %c0_17 = arith.constant 0 : index
    %c0_18 = arith.constant 0 : index
    %28 = vector.load %arg8[%c0_17, %c0_18] : memref<1x2xf32, #tpu.memory_space<vmem>>, vector<1x2xf32>
    %29 = vector.broadcast %28 : vector<1x2xf32> to vector<16x2xf32>
    %30 = arith.addf %27, %29 : vector<16x2xf32>
    %c0_19 = arith.constant 0 : index
    %c0_20 = arith.constant 0 : index
    %31 = vector.load %arg17[%c0_19, %c0_20] : memref<16x2xf32, #tpu.memory_space<vmem>>, vector<16x2xf32>
    tpu.vector_store %arg17[%c0_19, %c0_20], %30 {strides = array<i32>} : memref<16x2xf32, #tpu.memory_space<vmem>>, vector<16x2xf32>,
    %32 = vector.extract_strided_slice %30 {offsets = [0, 0], sizes = [16, 1], strides = [1, 1]} : vector<16x2xf32> to vector<16x1xf32>
    %33 = vector.extract_strided_slice %30 {offsets = [0, 1], sizes = [16, 1], strides = [1, 1]} : vector<16x2xf32> to vector<16x1xf32>
    %cst_21 = arith.constant -1.000000e+30 : f32
    %34 = vector.shape_cast %32 : vector<16x1xf32> to vector<16x1xf32>
    %35 = vector.broadcast %34 : vector<16x1xf32> to vector<16x2xf32>
    %36 = vector.broadcast %cst_21 : f32 to vector<16x2xf32>
    %37 = arith.select %11, %35, %36 : vector<16x2xi1>, vector<16x2xf32>
    %38 = vector.broadcast %8 : vector<16x1xi1> to vector<16x2xi1>
    %39 = arith.andi %11, %38 : vector<16x2xi1>
    %cst_22 = arith.constant -1.000000e+30 : f32
    %40 = vector.shape_cast %33 : vector<16x1xf32> to vector<16x1xf32>
    %41 = vector.broadcast %40 : vector<16x1xf32> to vector<16x2xf32>
    %42 = vector.broadcast %cst_22 : f32 to vector<16x2xf32>
    %43 = arith.select %39, %41, %42 : vector<16x2xi1>, vector<16x2xf32>
    %c0_23 = arith.constant 0 : index
    %c0_24 = arith.constant 0 : index
    %44 = vector.load %arg18[%c0_23, %c0_24] : memref<2x2xf32, #tpu.memory_space<vmem>>, vector<1x2xf32>
    %c1 = arith.constant 1 : index
    %c0_25 = arith.constant 0 : index
    %45 = vector.load %arg18[%c1, %c0_25] : memref<2x2xf32, #tpu.memory_space<vmem>>, vector<1x2xf32>
    %cst_26 = arith.constant dense<0xFF800000> : vector<2xf32>
    %46 = vector.multi_reduction <maximumf>, %37, %cst_26 [0] : vector<16x2xf32> to vector<2xf32>
    %47 = vector.shape_cast %46 : vector<2xf32> to vector<1x2xf32>
    %48 = arith.maximumf %44, %47 : vector<1x2xf32>
    %cst_27 = arith.constant dense<0xFF800000> : vector<2xf32>
    %49 = vector.multi_reduction <maximumf>, %43, %cst_27 [0] : vector<16x2xf32> to vector<2xf32>
    %50 = vector.shape_cast %49 : vector<2xf32> to vector<1x2xf32>
    %51 = arith.maximumf %45, %50 : vector<1x2xf32>
    %52 = arith.subf %44, %48 : vector<1x2xf32>
    %53 = math.exp %52 : vector<1x2xf32>
    %54 = arith.subf %45, %51 : vector<1x2xf32>
    %55 = math.exp %54 : vector<1x2xf32>
    %56 = vector.broadcast %48 : vector<1x2xf32> to vector<16x2xf32>
    %57 = arith.subf %37, %56 : vector<16x2xf32>
    %58 = math.exp %57 : vector<16x2xf32>
    %cst_28 = arith.constant 0.000000e+00 : f32
    %59 = vector.broadcast %cst_28 : f32 to vector<16x2xf32>
    %60 = arith.select %11, %58, %59 : vector<16x2xi1>, vector<16x2xf32>
    %61 = vector.broadcast %8 : vector<16x1xi1> to vector<16x2xi1>
    %62 = arith.andi %11, %61 : vector<16x2xi1>
    %63 = vector.broadcast %51 : vector<1x2xf32> to vector<16x2xf32>
    %64 = arith.subf %43, %63 : vector<16x2xf32>
    %65 = math.exp %64 : vector<16x2xf32>
    %cst_29 = arith.constant 0.000000e+00 : f32
    %66 = vector.broadcast %cst_29 : f32 to vector<16x2xf32>
    %67 = arith.select %62, %65, %66 : vector<16x2xi1>, vector<16x2xf32>
    %c0_30 = arith.constant 0 : index
    %c0_31 = arith.constant 0 : index
    %68 = vector.load %arg19[%c0_30, %c0_31] : memref<2x2xf32, #tpu.memory_space<vmem>>, vector<1x2xf32>
    %69 = arith.mulf %68, %53 : vector<1x2xf32>
    %cst_32 = arith.constant dense<0.000000e+00> : vector<2xf32>
    %70 = vector.multi_reduction <add>, %60, %cst_32 [0] : vector<16x2xf32> to vector<2xf32>
    %71 = vector.shape_cast %70 : vector<2xf32> to vector<1x2xf32>
    %72 = arith.addf %69, %71 : vector<1x2xf32>
    %c0_33 = arith.constant 0 : index
    %c0_34 = arith.constant 0 : index
    %73 = vector.load %arg19[%c0_33, %c0_34] : memref<2x2xf32, #tpu.memory_space<vmem>>, vector<1x2xf32>
    tpu.vector_store %arg19[%c0_33, %c0_34], %72 {strides = array<i32>} : memref<2x2xf32, #tpu.memory_space<vmem>>, vector<1x2xf32>,
    %c1_35 = arith.constant 1 : index
    %c0_36 = arith.constant 0 : index
    %74 = vector.load %arg19[%c1_35, %c0_36] : memref<2x2xf32, #tpu.memory_space<vmem>>, vector<1x2xf32>
    %75 = arith.mulf %74, %55 : vector<1x2xf32>
    %cst_37 = arith.constant dense<0.000000e+00> : vector<2xf32>
    %76 = vector.multi_reduction <add>, %67, %cst_37 [0] : vector<16x2xf32> to vector<2xf32>
    %77 = vector.shape_cast %76 : vector<2xf32> to vector<1x2xf32>
    %78 = arith.addf %75, %77 : vector<1x2xf32>
    %c1_38 = arith.constant 1 : index
    %c0_39 = arith.constant 0 : index
    %79 = vector.load %arg19[%c1_38, %c0_39] : memref<2x2xf32, #tpu.memory_space<vmem>>, vector<1x2xf32>
    tpu.vector_store %arg19[%c1_38, %c0_39], %78 {strides = array<i32>} : memref<2x2xf32, #tpu.memory_space<vmem>>, vector<1x2xf32>,
    %c0_40 = arith.constant 0 : index
    %c0_41 = arith.constant 0 : index
    %80 = vector.load %arg18[%c0_40, %c0_41] : memref<2x2xf32, #tpu.memory_space<vmem>>, vector<1x2xf32>
    tpu.vector_store %arg18[%c0_40, %c0_41], %48 {strides = array<i32>} : memref<2x2xf32, #tpu.memory_space<vmem>>, vector<1x2xf32>,
    %c1_42 = arith.constant 1 : index
    %c0_43 = arith.constant 0 : index
    %81 = vector.load %arg18[%c1_42, %c0_43] : memref<2x2xf32, #tpu.memory_space<vmem>>, vector<1x2xf32>
    tpu.vector_store %arg18[%c1_42, %c0_43], %51 {strides = array<i32>} : memref<2x2xf32, #tpu.memory_space<vmem>>, vector<1x2xf32>,
    %cst_44 = arith.constant dense<0.000000e+00> : vector<16xf32>
    %82 = vector.multi_reduction <add>, %60, %cst_44 [1] : vector<16x2xf32> to vector<16xf32>
    %83 = vector.shape_cast %82 : vector<16xf32> to vector<16x1xf32>
    %cst_45 = arith.constant dense<0.000000e+00> : vector<16xf32>
    %84 = vector.multi_reduction <add>, %67, %cst_45 [1] : vector<16x2xf32> to vector<16xf32>
    %85 = vector.shape_cast %84 : vector<16xf32> to vector<16x1xf32>
    %86 = tpu.iota {dimensions = array<i32: 0>} : vector<2x2xi32>
    %87 = tpu.iota {dimensions = array<i32: 1>} : vector<2x2xi32>
    %88 = arith.cmpi eq, %86, %87 : vector<2x2xi32>
    %89 = arith.extf %3 : vector<16x64xbf16> to vector<16x64xf32>
    %90 = vector.broadcast %83 : vector<16x1xf32> to vector<16x64xf32>
    %91 = arith.mulf %90, %89 : vector<16x64xf32>
    %92 = arith.truncf %91 : vector<16x64xf32> to vector<16x64xbf16>
    %93 = vector.broadcast %85 : vector<16x1xf32> to vector<16x64xf32>
    %94 = arith.mulf %93, %89 : vector<16x64xf32>
    %95 = arith.truncf %94 : vector<16x64xf32> to vector<16x64xbf16>
    %c0_46 = arith.constant 0 : index
    %c0_47 = arith.constant 0 : index
    %96 = vector.load %arg22[%c0_46, %c0_47] : memref<2x64xf32, #tpu.memory_space<vmem>>, vector<2x64xf32>
    %cst_48 = arith.constant 0.000000e+00 : f32
    %97 = vector.shape_cast %53 : vector<1x2xf32> to vector<1x2xf32>
    %98 = vector.broadcast %97 : vector<1x2xf32> to vector<2x2xf32>
    %99 = vector.broadcast %cst_48 : f32 to vector<2x2xf32>
    %100 = arith.select %88, %98, %99 : vector<2x2xi1>, vector<2x2xf32>
    %cst_49 = arith.constant dense<0.000000e+00> : vector<2xf32>
    %101 = vector.multi_reduction <add>, %100, %cst_49 [1] : vector<2x2xf32> to vector<2xf32>
    %102 = vector.shape_cast %101 : vector<2xf32> to vector<2x1xf32>
    %103 = vector.broadcast %102 : vector<2x1xf32> to vector<2x64xf32>
    %104 = arith.mulf %96, %103 : vector<2x64xf32>
    %cst_50 = arith.constant dense<0.000000e+00> : vector<2x64xf32>
    %105 = tpu.matmul %17, %92, %cst_50 {dimension_numbers = #tpu.dot_dimension_numbers<[1], [0], [0], [1], [0, 0, 1, 1], [], []>} : vector<2x16xbf16>, vector<16x64xbf16>, vector<2x64xf32> -> vector<2x64xf32>
    %106 = arith.addf %104, %105 : vector<2x64xf32>
    %c0_51 = arith.constant 0 : index
    %c0_52 = arith.constant 0 : index
    %107 = vector.load %arg22[%c0_51, %c0_52] : memref<2x64xf32, #tpu.memory_space<vmem>>, vector<2x64xf32>
    tpu.vector_store %arg22[%c0_51, %c0_52], %106 {strides = array<i32>} : memref<2x64xf32, #tpu.memory_space<vmem>>, vector<2x64xf32>,
    %c0_53 = arith.constant 0 : index
    %c0_54 = arith.constant 0 : index
    %108 = vector.load %arg23[%c0_53, %c0_54] : memref<2x64xf32, #tpu.memory_space<vmem>>, vector<2x64xf32>
    %cst_55 = arith.constant 0.000000e+00 : f32
    %109 = vector.shape_cast %55 : vector<1x2xf32> to vector<1x2xf32>
    %110 = vector.broadcast %109 : vector<1x2xf32> to vector<2x2xf32>
    %111 = vector.broadcast %cst_55 : f32 to vector<2x2xf32>
    %112 = arith.select %88, %110, %111 : vector<2x2xi1>, vector<2x2xf32>
    %cst_56 = arith.constant dense<0.000000e+00> : vector<2xf32>
    %113 = vector.multi_reduction <add>, %112, %cst_56 [1] : vector<2x2xf32> to vector<2xf32>
    %114 = vector.shape_cast %113 : vector<2xf32> to vector<2x1xf32>
    %115 = vector.broadcast %114 : vector<2x1xf32> to vector<2x64xf32>
    %116 = arith.mulf %108, %115 : vector<2x64xf32>
    %cst_57 = arith.constant dense<0.000000e+00> : vector<2x64xf32>
    %117 = tpu.matmul %17, %95, %cst_57 {dimension_numbers = #tpu.dot_dimension_numbers<[1], [0], [0], [1], [0, 0, 1, 1], [], []>} : vector<2x16xbf16>, vector<16x64xbf16>, vector<2x64xf32> -> vector<2x64xf32>
    %118 = arith.addf %116, %117 : vector<2x64xf32>
    %c0_58 = arith.constant 0 : index
    %c0_59 = arith.constant 0 : index
    %119 = vector.load %arg23[%c0_58, %c0_59] : memref<2x64xf32, #tpu.memory_space<vmem>>, vector<2x64xf32>
    tpu.vector_store %arg23[%c0_58, %c0_59], %118 {strides = array<i32>} : memref<2x64xf32, #tpu.memory_space<vmem>>, vector<2x64xf32>,
    %c0_i32_60 = arith.constant 0 : i32
    %120 = arith.cmpi eq, %arg0, %c0_i32_60 : i32
    %121 = arith.extui %120 : i1 to i32
    %c0_i32_61 = arith.constant 0 : i32
    %122 = arith.cmpi ne, %121, %c0_i32_61 : i32
    scf.if %122 {
      %c0_62 = arith.constant 0 : index
      %c0_63 = arith.constant 0 : index
      %123 = vector.load %arg19[%c0_62, %c0_63] : memref<2x2xf32, #tpu.memory_space<vmem>>, vector<1x2xf32>
      %cst_64 = arith.constant 0.000000e+00 : f32
      %124 = vector.shape_cast %123 : vector<1x2xf32> to vector<1x2xf32>
      %125 = vector.broadcast %124 : vector<1x2xf32> to vector<2x2xf32>
      %126 = vector.broadcast %cst_64 : f32 to vector<2x2xf32>
      %127 = arith.select %88, %125, %126 : vector<2x2xi1>, vector<2x2xf32>
      %cst_65 = arith.constant dense<0.000000e+00> : vector<2xf32>
      %128 = vector.multi_reduction <add>, %127, %cst_65 [1] : vector<2x2xf32> to vector<2xf32>
      %129 = vector.shape_cast %128 : vector<2xf32> to vector<2x1xf32>
      %cst_66 = arith.constant 1.000000e-16 : f32
      %130 = vector.broadcast %cst_66 : f32 to vector<2x1xf32>
      %131 = arith.maximumf %129, %130 : vector<2x1xf32>
      %c1_67 = arith.constant 1 : index
      %c0_68 = arith.constant 0 : index
      %132 = vector.load %arg19[%c1_67, %c0_68] : memref<2x2xf32, #tpu.memory_space<vmem>>, vector<1x2xf32>
      %cst_69 = arith.constant 0.000000e+00 : f32
      %133 = vector.shape_cast %132 : vector<1x2xf32> to vector<1x2xf32>
      %134 = vector.broadcast %133 : vector<1x2xf32> to vector<2x2xf32>
      %135 = vector.broadcast %cst_69 : f32 to vector<2x2xf32>
      %136 = arith.select %88, %134, %135 : vector<2x2xi1>, vector<2x2xf32>
      %cst_70 = arith.constant dense<0.000000e+00> : vector<2xf32>
      %137 = vector.multi_reduction <add>, %136, %cst_70 [1] : vector<2x2xf32> to vector<2xf32>
      %138 = vector.shape_cast %137 : vector<2xf32> to vector<2x1xf32>
      %cst_71 = arith.constant 1.000000e-16 : f32
      %139 = vector.broadcast %cst_71 : f32 to vector<2x1xf32>
      %140 = arith.maximumf %138, %139 : vector<2x1xf32>
      %c0_72 = arith.constant 0 : index
      %c0_73 = arith.constant 0 : index
      %141 = vector.load %arg22[%c0_72, %c0_73] : memref<2x64xf32, #tpu.memory_space<vmem>>, vector<2x64xf32>
      %142 = vector.broadcast %131 : vector<2x1xf32> to vector<2x64xf32>
      %143 = arith.divf %141, %142 : vector<2x64xf32>
      %c0_74 = arith.constant 0 : index
      %c0_75 = arith.constant 0 : index
      %144 = vector.load %arg23[%c0_74, %c0_75] : memref<2x64xf32, #tpu.memory_space<vmem>>, vector<2x64xf32>
      %145 = vector.broadcast %140 : vector<2x1xf32> to vector<2x64xf32>
      %146 = arith.divf %144, %145 : vector<2x64xf32>
      %147 = arith.addf %143, %146 : vector<2x64xf32>
      %c0_76 = arith.constant 0 : index
      %c0_77 = arith.constant 0 : index
      %148 = vector.load %arg9[%c0_76, %c0_77] : memref<64x32xf32, #tpu.memory_space<vmem>>, vector<64x32xf32>
      %cst_78 = arith.constant dense<0.000000e+00> : vector<2x32xf32>
      %149 = tpu.matmul %147, %148, %cst_78 {dimension_numbers = #tpu.dot_dimension_numbers<[1], [0], [0], [1], [0, 0, 1, 1], [], []>} : vector<2x64xf32>, vector<64x32xf32>, vector<2x32xf32> -> vector<2x32xf32>
      %c0_79 = arith.constant 0 : index
      %c0_80 = arith.constant 0 : index
      %150 = vector.load %arg10[%c0_79, %c0_80] : memref<1x32xf32, #tpu.memory_space<vmem>>, vector<1x32xf32>
      %151 = vector.broadcast %150 : vector<1x32xf32> to vector<2x32xf32>
      %152 = arith.addf %149, %151 : vector<2x32xf32>
      %cst_81 = arith.constant 0.000000e+00 : f32
      %153 = vector.broadcast %cst_81 : f32 to vector<2x32xf32>
      %154 = arith.maximumf %152, %153 : vector<2x32xf32>
      %c0_82 = arith.constant 0 : index
      %c0_83 = arith.constant 0 : index
      %155 = vector.load %arg11[%c0_82, %c0_83] : memref<32x8xf32, #tpu.memory_space<vmem>>, vector<32x8xf32>
      %cst_84 = arith.constant dense<0.000000e+00> : vector<2x8xf32>
      %156 = tpu.matmul %154, %155, %cst_84 {dimension_numbers = #tpu.dot_dimension_numbers<[1], [0], [0], [1], [0, 0, 1, 1], [], []>} : vector<2x32xf32>, vector<32x8xf32>, vector<2x8xf32> -> vector<2x8xf32>
      %c0_85 = arith.constant 0 : index
      %c0_86 = arith.constant 0 : index
      %157 = vector.load %arg12[%c0_85, %c0_86] : memref<1x8xf32, #tpu.memory_space<vmem>>, vector<1x8xf32>
      %158 = vector.broadcast %157 : vector<1x8xf32> to vector<2x8xf32>
      %159 = arith.addf %156, %158 : vector<2x8xf32>
      %c0_87 = arith.constant 0 : index
      %c0_88 = arith.constant 0 : index
      %160 = vector.load %arg20[%c0_87, %c0_88] : memref<2x8xf32, #tpu.memory_space<vmem>>, vector<2x8xf32>
      tpu.vector_store %arg20[%c0_87, %c0_88], %159 {strides = array<i32>} : memref<2x8xf32, #tpu.memory_space<vmem>>, vector<2x8xf32>,
      %c0_89 = arith.constant 0 : index
      %c0_90 = arith.constant 0 : index
      %161 = vector.load %arg13[%c0_89, %c0_90] : memref<64x32xf32, #tpu.memory_space<vmem>>, vector<64x32xf32>
      %cst_91 = arith.constant dense<0.000000e+00> : vector<2x32xf32>
      %162 = tpu.matmul %147, %161, %cst_91 {dimension_numbers = #tpu.dot_dimension_numbers<[1], [0], [0], [1], [0, 0, 1, 1], [], []>} : vector<2x64xf32>, vector<64x32xf32>, vector<2x32xf32> -> vector<2x32xf32>
      %c0_92 = arith.constant 0 : index
      %c0_93 = arith.constant 0 : index
      %163 = vector.load %arg14[%c0_92, %c0_93] : memref<1x32xf32, #tpu.memory_space<vmem>>, vector<1x32xf32>
      %164 = vector.broadcast %163 : vector<1x32xf32> to vector<2x32xf32>
      %165 = arith.addf %162, %164 : vector<2x32xf32>
      %cst_94 = arith.constant 0.000000e+00 : f32
      %166 = vector.broadcast %cst_94 : f32 to vector<2x32xf32>
      %167 = arith.maximumf %165, %166 : vector<2x32xf32>
      %c0_95 = arith.constant 0 : index
      %c0_96 = arith.constant 0 : index
      %168 = vector.load %arg15[%c0_95, %c0_96] : memref<32x8xf32, #tpu.memory_space<vmem>>, vector<32x8xf32>
      %cst_97 = arith.constant dense<0.000000e+00> : vector<2x8xf32>
      %169 = tpu.matmul %167, %168, %cst_97 {dimension_numbers = #tpu.dot_dimension_numbers<[1], [0], [0], [1], [0, 0, 1, 1], [], []>} : vector<2x32xf32>, vector<32x8xf32>, vector<2x8xf32> -> vector<2x8xf32>
      %c0_98 = arith.constant 0 : index
      %c0_99 = arith.constant 0 : index
      %170 = vector.load %arg16[%c0_98, %c0_99] : memref<1x8xf32, #tpu.memory_space<vmem>>, vector<1x8xf32>
      %171 = vector.broadcast %170 : vector<1x8xf32> to vector<2x8xf32>
      %172 = arith.addf %169, %171 : vector<2x8xf32>
      %c0_100 = arith.constant 0 : index
      %c0_101 = arith.constant 0 : index
      %173 = vector.load %arg21[%c0_100, %c0_101] : memref<2x8xf32, #tpu.memory_space<vmem>>, vector<2x8xf32>
      tpu.vector_store %arg21[%c0_100, %c0_101], %172 {strides = array<i32>} : memref<2x8xf32, #tpu.memory_space<vmem>>, vector<2x8xf32>,
    } else {
    }
    return
  }
  func.func @transform_0(%arg0: i32) -> (i32, i32) {
    %c0_i32 = arith.constant 0 : i32
    %c0_i32_0 = arith.constant 0 : i32
    return %arg0, %c0_i32 : i32, i32
  }
  func.func @transform_1(%arg0: i32) -> (i32, i32) {
    %c0_i32 = arith.constant 0 : i32
    %c0_i32_0 = arith.constant 0 : i32
    return %arg0, %c0_i32 : i32, i32
  }
  func.func @transform_2(%arg0: i32) -> (i32, i32) {
    %c0_i32 = arith.constant 0 : i32
    %c0_i32_0 = arith.constant 0 : i32
    return %c0_i32, %arg0 : i32, i32
  }
  func.func @transform_3(%arg0: i32) -> (i32, i32) {
    %c0_i32 = arith.constant 0 : i32
    %c0_i32_0 = arith.constant 0 : i32
    return %arg0, %c0_i32 : i32, i32
  }
  func.func @transform_4(%arg0: i32) -> (i32, i32) {
    %c0_i32 = arith.constant 0 : i32
    %c0_i32_0 = arith.constant 0 : i32
    %c0_i32_1 = arith.constant 0 : i32
    return %c0_i32, %c0_i32_0 : i32, i32
  }
  func.func @transform_5(%arg0: i32) -> (i32, i32) {
    %c0_i32 = arith.constant 0 : i32
    %c0_i32_0 = arith.constant 0 : i32
    %c0_i32_1 = arith.constant 0 : i32
    return %c0_i32, %c0_i32_0 : i32, i32
  }
  func.func @transform_6(%arg0: i32) -> (i32, i32) {
    %c0_i32 = arith.constant 0 : i32
    %c0_i32_0 = arith.constant 0 : i32
    %c0_i32_1 = arith.constant 0 : i32
    return %c0_i32, %c0_i32_0 : i32, i32
  }
  func.func @transform_7(%arg0: i32) -> (i32, i32) {
    %c0_i32 = arith.constant 0 : i32
    %c0_i32_0 = arith.constant 0 : i32
    %c0_i32_1 = arith.constant 0 : i32
    return %c0_i32, %c0_i32_0 : i32, i32
  }
  func.func @transform_8(%arg0: i32) -> (i32, i32) {
    %c0_i32 = arith.constant 0 : i32
    %c0_i32_0 = arith.constant 0 : i32
    %c0_i32_1 = arith.constant 0 : i32
    return %c0_i32, %c0_i32_0 : i32, i32
  }
  func.func @transform_9(%arg0: i32) -> (i32, i32) {
    %c0_i32 = arith.constant 0 : i32
    %c0_i32_0 = arith.constant 0 : i32
    %c0_i32_1 = arith.constant 0 : i32
    return %c0_i32, %c0_i32_0 : i32, i32
  }
  func.func @transform_10(%arg0: i32) -> (i32, i32) {
    %c0_i32 = arith.constant 0 : i32
    %c0_i32_0 = arith.constant 0 : i32
    %c0_i32_1 = arith.constant 0 : i32
    return %c0_i32, %c0_i32_0 : i32, i32
  }
  func.func @transform_11(%arg0: i32) -> (i32, i32) {
    %c0_i32 = arith.constant 0 : i32
    %c0_i32_0 = arith.constant 0 : i32
    %c0_i32_1 = arith.constant 0 : i32
    return %c0_i32, %c0_i32_0 : i32, i32
  }
  func.func @transform_12(%arg0: i32) -> (i32, i32) {
    %c0_i32 = arith.constant 0 : i32
    %c0_i32_0 = arith.constant 0 : i32
    %c0_i32_1 = arith.constant 0 : i32
    return %c0_i32, %c0_i32_0 : i32, i32
  }
  func.func @transform_13(%arg0: i32) -> (i32, i32) {
    %c0_i32 = arith.constant 0 : i32
    %c0_i32_0 = arith.constant 0 : i32
    %c0_i32_1 = arith.constant 0 : i32
    return %c0_i32, %c0_i32_0 : i32, i32
  }
  func.func @transform_14(%arg0: i32) -> (i32, i32) {
    %c0_i32 = arith.constant 0 : i32
    %c0_i32_0 = arith.constant 0 : i32
    %c0_i32_1 = arith.constant 0 : i32
    return %c0_i32, %c0_i32_0 : i32, i32
  }
  func.func @transform_15(%arg0: i32) -> (i32, i32) {
    %c0_i32 = arith.constant 0 : i32
    %c0_i32_0 = arith.constant 0 : i32
    %c0_i32_1 = arith.constant 0 : i32
    return %c0_i32, %c0_i32_0 : i32, i32
  }
  func.func @transform_16(%arg0: i32) -> (i32, i32) {
    %c0_i32 = arith.constant 0 : i32
    %c0_i32_0 = arith.constant 0 : i32
    return %arg0, %c0_i32 : i32, i32
  }
  func.func @transform_17(%arg0: i32) -> (i32, i32) {
    %c0_i32 = arith.constant 0 : i32
    %c0_i32_0 = arith.constant 0 : i32
    %c0_i32_1 = arith.constant 0 : i32
    return %c0_i32, %c0_i32_0 : i32, i32
  }
  func.func @transform_18(%arg0: i32) -> (i32, i32) {
    %c0_i32 = arith.constant 0 : i32
    %c0_i32_0 = arith.constant 0 : i32
    %c0_i32_1 = arith.constant 0 : i32
    return %c0_i32, %c0_i32_0 : i32, i32
  }
  func.func @transform_19(%arg0: i32) -> (i32, i32) {
    %c0_i32 = arith.constant 0 : i32
    %c0_i32_0 = arith.constant 0 : i32
    %c0_i32_1 = arith.constant 0 : i32
    return %c0_i32, %c0_i32_0 : i32, i32
  }
  func.func @transform_20(%arg0: i32) -> (i32, i32) {
    %c0_i32 = arith.constant 0 : i32
    %c0_i32_0 = arith.constant 0 : i32
    %c0_i32_1 = arith.constant 0 : i32
    return %c0_i32, %c0_i32_0 : i32, i32
  }
}

</mosaic_0001>

<bundles_post_ra>
// kernel: tpu_custom_call.1
= control target key start
LH: loop header
LB: loop body
LE: loop exit
PB: predicated region body
PF: predicated region fallthrough
CT: control target
= control target key end

     0   :  { %s1733_s0 = inlined_call_operand.vmem [shape: bf16[16,64], index: 0, kind: input, shape index: {}]   ;;  %s1734_s1 = inlined_call_operand.vmem [shape: s32[16,1], index: 1, kind: input, shape index: {}]   ;;  %s1735_s2 = inlined_call_operand.vmem [shape: s32[1,16], index: 2, kind: input, shape index: {}]   ;;  %s1736_s3 = inlined_call_operand.vmem [shape: f32[16,1], index: 3, kind: input, shape index: {}]   ;;  %s1737_s4 = inlined_call_operand.vmem [shape: bf16[64,128], index: 4, kind: input, shape index: {}]   ;;  %s1738_s5 = inlined_call_operand.vmem [shape: f32[1,128], index: 5, kind: input, shape index: {}]   ;;  %s1739_s6 = inlined_call_operand.vmem [shape: bf16[128,2], index: 6, kind: input, shape index: {}]   ;;  %s1740_s7 = inlined_call_operand.vmem [shape: f32[1,2], index: 7, kind: input, shape index: {}]   ;;  %s1741_s8 = inlined_call_operand.vmem [shape: f32[64,32], index: 8, kind: input, shape index: {}]   ;;  %s1742_s9 = inlined_call_operand.vmem [shape: f32[1,32], index: 9, kind: input, shape index: {}]   ;;  %s1743_s10 = inlined_call_operand.vmem [shape: f32[32,8], index: 10, kind: input, shape index: {}]   ;;  %s1744_s11 = inlined_call_operand.vmem [shape: f32[1,8], index: 11, kind: input, shape index: {}]   ;;  %s1745_s12 = inlined_call_operand.vmem [shape: f32[64,32], index: 12, kind: input, shape index: {}]   ;;  %s1746_s13 = inlined_call_operand.vmem [shape: f32[1,32], index: 13, kind: input, shape index: {}]   ;;  %s1747_s14 = inlined_call_operand.vmem [shape: f32[32,8], index: 14, kind: input, shape index: {}]   ;;  %s1748_s15 = inlined_call_operand.vmem [shape: f32[1,8], index: 15, kind: input, shape index: {}]   ;;  %s1749_s16 = inlined_call_operand.vmem [shape: f32[16,2], index: 16, kind: output, shape index: {0}]   ;;  %s1750_s17 = inlined_call_operand.hbm [shape: f32[2,2], index: 17, kind: output, shape index: {1}]   ;;  %s1751_s18 = inlined_call_operand.hbm [shape: f32[2,2], index: 18, kind: output, shape index: {2}]   ;;  %s1752_s19 = inlined_call_operand.hbm [shape: f32[2,8], index: 19, kind: output, shape index: {3}]   ;;  %s1753_s20 = inlined_call_operand.hbm [shape: f32[2,8], index: 20, kind: output, shape index: {4}]  }
   0x1   :  { %1757 = sst [smem:[#allocation14_spill]] %s1733_s0 }
   0x2   :  { %1758 = sst [smem:[#allocation15_spill]] %s1734_s1 }
   0x3   :  { %1759 = sst [smem:[#allocation16_spill]] %s1735_s2 }
   0x4   :  { %1760 = sst [smem:[#allocation17_spill]] %s1736_s3 }
   0x5   :  { %1761 = sst [smem:[#allocation18_spill]] %s1737_s4 }
   0x6   :  { %26 = vsyncpa [#allocation5], 0 }
   0x7   :  { %27 = vsyncpa [#allocation7], 0  ;;  %s1762_s23 = sld [smem:[#allocation18_spill]]  ;;  %v1295_v1 = vmov 0.0   ;;  %vm1296_vm0 = vmmov 0   ;;  %v1184_v3 = vld [vmem:[%s1739_s6 + $0x38] sm:$0xff]  }
   0x8   :  { %1062 = vmatprep.subr.bf16.mxu0 %v1295_v1  ;;  %1074 = vmatprep.subr.bf16.mxu1 %v1295_v1  ;;  %v1185_v5 = vld [vmem:[%s1739_s6 + $0x30] sm:$0xff]   ;;  %s1763_s1 = sld [smem:[#allocation14_spill]]  ;;  %v1186_v8 = vld [vmem:[%s1739_s6 + $0x28] sm:$0xff]  }
   0x9   :  { %1070 = vmatprep.mubr.msk.bf16.mxu0 %vm1296_vm0, %v1295_v1  ;;  %1090 = vmatprep.mubr.msk.bf16.mxu1 %vm1296_vm0, %v1295_v1 }
   0xa   :  { %1075 = vmatpush3.bf16.msra.mxu1 %v1184_v3 }
   0xb   :  { %1076 = vmatprep.subr.bf16.mxu1 %v1295_v1 }
   0xd   :  { %v1179_v0 = vld [vmem:[%s1762_s23 + $0x18] sm:$0xff]   ;;  %v1180_v2 = vld [vmem:[%s1762_s23 + $0x10] sm:$0xff]   ;;  %v1181_v4 = vld [vmem:[%s1762_s23 + $0x8] sm:$0xff]  }
   0xe   :  { %1063 = vmatpush3.bf16.msra.mxu0 %v1179_v0  ;;  %v1182_v6 = vld [vmem:[%s1762_s23] sm:$0xff]   ;;  %1077 = vmatpush3.bf16.msra.mxu1 %v1185_v5 }
   0xf   :  { %1064 = vmatprep.subr.bf16.mxu0 %v1295_v1  ;;  %v1439_v7 = vld [vmem:[%s1763_s1] sm:$0xff]  }
  0x12   :  { %1065 = vmatpush3.bf16.msra.mxu0 %v1180_v2 }
  0x13   :  { %1066 = vmatprep.subr.bf16.mxu0 %v1295_v1 }
  0x16   :  { %1067 = vmatpush3.bf16.msra.mxu0 %v1181_v4 }
  0x17   :  { %1068 = vmatprep.subr.bf16.mxu0 %v1295_v1 }
  0x18   :  { %28 = vsyncpa [#allocation10], 0  ;;  %1078 = vmatprep.subr.bf16.mxu1 %v1295_v1  ;;  %vm145_vm1 = vcmask 523264   ;;  %v1187_v9 = vld [vmem:[%s1739_s6 + $0x20] sm:$0xff]   ;;  %v1188_v10 = vld [vmem:[%s1739_s6 + $0x18] sm:$0xff]   ;;  %s1764_s1 = sld [smem:[#allocation15_spill]]  ;;  %v81_v41 = vlaneseq }
  0x19   :  { %1079 = vmatpush3.bf16.msra.mxu1 %v1186_v8  ;;  %v1189_v11 = vld [vmem:[%s1739_s6 + $0x10] sm:$0xff]   ;;  %v1190_v12 = vld [vmem:[%s1739_s6 + $0x8] sm:$0xff]   ;;  %v1191_v13 = vld [vmem:[%s1739_s6] sm:$0xff]   ;;  %v1297_v15 = vmov 0   ;;  %s1765_s23 = sld [smem:[#allocation17_spill]]  ;;  %v1298_v29 = vmov 1  }
  0x1a   :  { %1069 = vmatpush3.bf16.msra.mxu0 %v1182_v6  ;;  %1080 = vmatprep.subr.bf16.mxu1 %v1295_v1  ;;  %v988_v19 = vld [vmem:[%s1738_s5] ss:$0 sm:$0xff]  ;;  %vm305_vm3 = vcmask 15360   ;;  %vm66_vm4 = vcmask 9216   ;;  %v1299_v35 = vmov -1e+30  }
  0x1b   :  { %1094 = vmatprep.subr.bf16.mxu0 %v1295_v1  ;;  %1175 = vset.pattern.permute.xlu0 %v1297_v15  ;;  %v995_v30 = vld [vmem:[%s1740_s7] ss:$0 sm:$0xff]  ;;  %67 = vst.msk [vmem:[#allocation4] sm:$0x3] %vm66_vm4, %v1299_v35  ;;  %68 = vst.msk [vmem:[#allocation6] sm:$0x3] %vm66_vm4, %v1295_v1 }
  0x1c   :  { %1176 = vset.pattern.permute.xlu1 %v1297_v15  ;;  %v1505_v42 = vand.u32 127, %v81_v41  ;;  %v1539_v62 = vshrl.u32 %v81_v41, 7  ;;  %vm406_vm12 = vcmask 8192   ;;  %vm69_vm14 = vcmask 517120   ;;  %s1770_s21 = sld [smem:[#allocation16_spill]] }
  0x1d   :  { %1071 = vmatmul.mubr.msk.bf16.vlgmr.msra.gmra.mxu0 %vm145_vm1, %v1439_v7  ;;  %1081 = vmatpush3.bf16.msra.mxu1 %v1187_v9  ;;  %70 = vst.msk [vmem:[#allocation2] sm:$0x3] %vm69_vm14, %v1295_v1  ;;  %71 = vst.msk [vmem:[#allocation3] sm:$0x3] %vm69_vm14, %v1295_v1 }
  0x1e   :  { %1096 = vmatprep.mubr.msk.bf16.mxu0 %vm1296_vm0, %v1295_v1  ;;  %1082 = vmatprep.subr.bf16.mxu1 %v1295_v1  ;;  %v74_v14 = vld [vmem:[%s1764_s1] sm:$0xff]  ;;  %v75_v17 = vld [vmem:[%s1764_s1 + $0x8] sm:$0xff]  ;;  %v1544_v8 = vsub.s32 0, %v1539_v62  ;;  %vm431_vm13 = vcmp.eq.s32.totalorder %v1539_v62, %v1505_v42 }
  0x1f   :  { %v77_v16 = vld [vmem:[%s1765_s23] sm:$0xff]  ;;  %84 = vperm.xlu0 %1175, %v74_v14   ;;  %v78_v34 = vld [vmem:[%s1765_s23 + $0x8] sm:$0xff] }
  0x20   :  { %vm79_vm2 = vcmp.gt.f32.partialorder %v77_v16, 0.0  ;;  %vm80_vm5 = vcmp.gt.f32.partialorder %v78_v34, 0.0 }
  0x21   :  { %1083 = vmatpush3.bf16.msra.mxu1 %v1188_v10  ;;  %v320_v18 = vsel %vm79_vm2, 1, %v1297_v15  ;;  %v321_v39 = vsel %vm80_vm5, 1, %v1297_v15  ;;  %vm451_vm2 = vcmask 130048  }
  0x22   :  { %1084 = vmatprep.subr.bf16.mxu1 %v1295_v1  ;;  %v342_v5 = vld [vmem:[#allocation4] sm:$0x1] }
  0x23   :  { %87 = vperm.xlu0 %1175, %v75_v17  }
  0x25   :  { %1085 = vmatpush3.bf16.msra.mxu1 %v1189_v11 }
  0x26   :  { %1086 = vmatprep.subr.bf16.mxu1 %v1295_v1 }
  0x27   :  { %323 = vperm.xlu0 %1175, %v320_v18  }
  0x29   :  { %1087 = vmatpush3.bf16.msra.mxu1 %v1190_v12 }
  0x2a   :  { %1088 = vmatprep.subr.bf16.mxu1 %v1295_v1 }
  0x2b   :  { %1177 = vset.pattern.permute.xlu0 %v1298_v29 }
  0x2d   :  { %1089 = vmatpush3.bf16.msra.mxu1 %v1191_v13 }
  0x2e   :  { %1125 = vmatprep.subr.mxu1 %v1295_v1 }
  0x9a   :  { %v1503_v40 = vpop.permute.xlu0 %84 }
  0x9b   :  { %vm89_vm6 = vcmp.eq.s32.totalorder %v1503_v40, %v1505_v42 }
  0x9e   :  { %v1507_v43 = vpop.permute.xlu0 %87 }
  0x9f   :  { %vm90_vm7 = vcmp.eq.s32.totalorder %v1507_v43, %v1505_v42 }
  0xa2   :  { %v324_v45 = vpop.permute.xlu0 %323 }
  0xa3   :  { %vm328_vm8 = vcmp.eq.s32.totalorder %v324_v45, 1 }
  0xa4   :  { %vm1524_vm9 = vmand %vm89_vm6, %vm328_vm8 }
  0xdd   :  { %v183_v20 = vpop.f32.mrf.mxu0 }
  0xde   :  { %v184_v22 = vadd.f32 %v988_v19, %v183_v20  ;;  %v343_v20 = vld [vmem:[#allocation4 + $0x1] sm:$0x1] }
  0xdf   :  { %v1072_v21 = vpop.f32.mrf.mxu0 }
  0xe0   :  { %v190_v26 = vmax.f32 %v184_v22, 0.0 }
  0xe1   :  { %v186_v23 = vpop.f32.mrf.mxu0 }
  0xe2   :  { %v187_v24 = vadd.f32 %v988_v19, %v186_v23 }
  0xe3   :  { %v1073_v25 = vpop.f32.mrf.mxu0 }
  0xe4   :  { %v191_v27 = vmax.f32 %v187_v24, 0.0 }
  0xe6   :  { %v192_v28 = vpack.c.bf16 %v191_v27, %v190_v26 }
  0xe8   :  { %1091 = vmatmul.mubr.bf16.vlgmr.msra.gmra.mxu1 %v192_v28 }
  0xe9   :  { %1133 = vmatprep.mubr.msk.f32.mxu1 %vm1296_vm0, %v1295_v1 }
 0x1a8   :  { %v298_v31 = vpop.f32.mrf.mxu1 }
 0x1a9   :  { %v299_v32 = vadd.f32 %v995_v30, %v298_v31 }
 0x1aa   :  { %v1092_v33 = vpop.f32.mrf.mxu1 }
 0x1ab   :  { %306 = vst.msk [vmem:[%s1749_s16] sm:$0xff] %vm305_vm3, %v299_v32  ;;  %333 = vperm.xlu0 %1177, %v299_v32   ;;  %310 = vperm.xlu1 %1176, %v299_v32  }
 0x1ac   :  { %v301_v36 = vpop.f32.mrf.mxu1 }
 0x1ad   :  { %v302_v37 = vadd.f32 %v995_v30, %v301_v36 }
 0x1ae   :  { %v1093_v38 = vpop.f32.mrf.mxu1 }
 0x1af   :  { %307 = vst.msk [vmem:[%s1749_s16 + $0x8] sm:$0xff] %vm305_vm3, %v302_v37  ;;  %315 = vperm.xlu1 %1176, %v302_v37  }
 0x1b3   :  { %326 = vperm.xlu1 %1176, %v321_v39  }
 0x1b7   :  { %1178 = vset.pattern.permute.xlu1 %v1298_v29 }
 0x1b8   :  { %337 = vperm.xlu1 %1178, %v302_v37  }
 0x226   :  { %v311_v44 = vpop.permute.xlu1 %310  ;;  %v334_v54 = vpop.permute.xlu0 %333 }
 0x227   :  { %v318_v46 = vsel %vm89_vm6, %v311_v44, -1e+30  ;;  %v340_v57 = vsel %vm1524_vm9, %v334_v54, -1e+30 }
 0x228   :  { %v344_v49 = vsel %vm305_vm3, %v318_v46, -inf  ;;  %v354_v63 = vsel %vm305_vm3, %v340_v57, -inf }
 0x22a   :  { %v316_v47 = vpop.permute.xlu1 %315 }
 0x22b   :  { %v319_v48 = vsel %vm90_vm7, %v316_v47, -1e+30 }
 0x22c   :  { %v345_v50 = vsel %vm305_vm3, %v319_v48, -inf }
 0x22d   :  { %v346_v51 = vmax.f32 %v344_v49, %v345_v50 }
 0x22e   :  { %v327_v52 = vpop.permute.xlu1 %326 }
 0x22f   :  { %v347_v55 = vrot.slane %v346_v51, 4  ;;  %vm329_vm10 = vcmp.eq.s32.totalorder %v327_v52, 1 }
 0x230   :  { %vm1533_vm11 = vmand %vm90_vm7, %vm329_vm10 }
 0x231   :  { %v348_v56 = vmax.f32 %v346_v51, %v347_v55  ;;  %v394_v51 = vld [vmem:[#allocation6] sm:$0x1] }
 0x233   :  { %v349_v58 = vrot.slane %v348_v56, 2  ;;  %v338_v60 = vpop.permute.xlu1 %337 }
 0x234   :  { %v341_v61 = vsel %vm1533_vm11, %v338_v60, -1e+30 }
 0x235   :  { %v350_v0 = vmax.f32 %v348_v56, %v349_v58  ;;  %v355_v2 = vsel %vm305_vm3, %v341_v61, -inf }
 0x236   :  { %v356_v3 = vmax.f32 %v354_v63, %v355_v2  ;;  %v408_v63 = vld [vmem:[#allocation6 + $0x1] sm:$0x1] }
 0x237   :  { %v351_v4 = vrot.slane %v350_v0, 1 }
 0x238   :  { %v357_v6 = vrot.slane %v356_v3, 4 }
 0x239   :  { %v352_v9 = vmax.f32 %v350_v0, %v351_v4 }
 0x23a   :  { %v358_v10 = vmax.f32 %v356_v3, %v357_v6 }
 0x23b   :  { %v353_v11 = vmax.f32 %v342_v5, %v352_v9 }
 0x23c   :  { %v359_v12 = vrot.slane %v358_v10, 2 }
 0x23d   :  { %v373_v13 = vrot.slane %v353_v11, %v1544_v8  ;;  %421 = vst.msk [vmem:[#allocation4] sm:$0x1] %vm406_vm12, %v353_v11  ;;  %v364_v24 = vsub.f32 %v342_v5, %v353_v11 }
 0x23e   :  { %v360_v14 = vmax.f32 %v358_v10, %v359_v12 }
 0x23f   :  { %v374_v15 = vsub.f32 %v318_v46, %v373_v13  ;;  %v375_v16 = vsub.f32 %v319_v48, %v373_v13  ;;  %v365_v29 = vmul.f32 1.442695, %v364_v24 }
 0x240   :  { %v361_v17 = vrot.slane %v360_v14, 1 }
 0x241   :  { %v376_v18 = vmul.f32 1.442695, %v374_v15  ;;  %v378_v19 = vmul.f32 1.442695, %v375_v16 }
 0x242   :  { %v362_v21 = vmax.f32 %v360_v14, %v361_v17 }
 0x243   :  { %1193 = vpow2.f32 %v376_v18  ;;  %v986_v18 = vld [vmem:[%s1770_s21] ss:$0 sm:$0xff] }
 0x244   :  { %1195 = vpow2.f32 %v378_v19  ;;  %v363_v22 = vmax.f32 %v343_v20, %v362_v21  ;;  %v432_v19 = vunpack.c.l.bf16 %v1439_v7  ;;  %vm97_vm15 = vcmp.eq.s32.totalorder %v1539_v62, %v986_v18  ;;  %v759_v18 = vld [vmem:[%s1745_s12 + $0x18] sm:$0xff] }
 0x245   :  { %v987_v42 = vsel %vm97_vm15, 1.0, %v1295_v1 }
 0x246   :  { %v385_v23 = vrot.slane %v363_v22, %v1544_v8  ;;  %422 = vst.msk [vmem:[#allocation4 + $0x1] sm:$0x1] %vm406_vm12, %v363_v22  ;;  %v367_v32 = vsub.f32 %v343_v20, %v363_v22  ;;  %v433_v20 = vunpack.c.h.bf16 %v1439_v7 }
 0x248   :  { %v386_v25 = vsub.f32 %v340_v57, %v385_v23  ;;  %v387_v26 = vsub.f32 %v341_v61, %v385_v23  ;;  %v368_v38 = vmul.f32 1.442695, %v367_v32  ;;  %v585_v32 = vld [vmem:[%s1741_s8 + $0x28] sm:$0xff] }
 0x24a   :  { %v388_v27 = vmul.f32 1.442695, %v386_v25  ;;  %v390_v28 = vmul.f32 1.442695, %v387_v26  ;;  %v100_v26 = vpack.c.bf16 %v987_v42, %v987_v42  ;;  %v842_v42 = vld [vmem:[%s1747_s14] sm:$0xff] }
 0x24c   :  { %1197 = vpow2.f32 %v388_v27 }
 0x24d   :  { %1199 = vpow2.f32 %v390_v28 }
 0x24e   :  { %1201 = vpow2.f32 %v365_v29 }
 0x24f   :  { %1203 = vpow2.f32 %v368_v38  ;;  %v672_v38 = vld [vmem:[%s1743_s10 + $0x18] sm:$0xff] }
 0x250   :  { %v1194_v30 = vpop.eup %1193  ;;  %1126 = vmatpush3.msra.mxu1 %v672_v38 }
 0x251   :  { %v1196_v31 = vpop.eup %1195  ;;  %v380_v33 = vsel %vm89_vm6, %v1194_v30, 0.0  ;;  %v587_v30 = vld [vmem:[%s1741_s8 + $0x38] sm:$0xff]  ;;  %1127 = vmatprep.subr.mxu1 %v1295_v1 }
 0x252   :  { %v381_v34 = vsel %vm90_vm7, %v1196_v31, 0.0  ;;  %v396_v35 = vsel %vm305_vm3, %v380_v33, 0.0  ;;  %v586_v31 = vld [vmem:[%s1741_s8 + $0x30] sm:$0xff]  ;;  %v584_v33 = vld [vmem:[%s1741_s8 + $0x20] sm:$0xff] }
 0x253   :  { %v397_v36 = vsel %vm305_vm3, %v381_v34, 0.0  ;;  %423 = vadd.xlane.f32.xlu1 %v396_v35  ;;  %v583_v34 = vld [vmem:[%s1741_s8 + $0x18] sm:$0xff] }
 0x254   :  { %425 = vadd.xlane.f32.xlu0 %v397_v36  ;;  %v398_v37 = vadd.f32 %v397_v36, %v396_v35  ;;  %v582_v35 = vld [vmem:[%s1741_s8 + $0x10] sm:$0xff]  ;;  %v581_v36 = vld [vmem:[%s1741_s8 + $0x8] sm:$0xff] }
 0x256   :  { %v399_v39 = vrot.slane %v398_v37, 4 }
 0x258   :  { %v400_v41 = vadd.f32 %v399_v39, %v398_v37  ;;  %v580_v37 = vld [vmem:[%s1741_s8] sm:$0xff]  ;;  %v671_v39 = vld [vmem:[%s1743_s10 + $0x10] sm:$0xff] }
 0x259   :  { %v1198_v44 = vpop.eup %1197  ;;  %1128 = vmatpush3.msra.mxu1 %v671_v39 }
 0x25a   :  { %v1200_v45 = vpop.eup %1199  ;;  %v401_v46 = vrot.slane %v400_v41, 2  ;;  %v392_v40 = vsel %vm1524_vm9, %v1198_v44, 0.0  ;;  %1129 = vmatprep.subr.mxu1 %v1295_v1  ;;  %v440_v44 = vld [vmem:[#allocation2] sm:$0x3] }
 0x25b   :  { %v410_v43 = vsel %vm305_vm3, %v392_v40, 0.0  ;;  %v393_v47 = vsel %vm1533_vm11, %v1200_v45, 0.0  ;;  %v1202_v50 = vpop.eup %1201 }
 0x25c   :  { %v402_v48 = vadd.f32 %v401_v46, %v400_v41  ;;  %427 = vadd.xlane.f32.xlu0 %v410_v43  ;;  %v411_v49 = vsel %vm305_vm3, %v393_v47, 0.0  ;;  %v395_v56 = vmul.f32 %v1202_v50, %v394_v51  ;;  %v1204_v59 = vpop.eup %1203  ;;  %v444_v4 = vrot.slane %v1202_v50, %v1544_v8 }
 0x25d   :  { %v412_v52 = vadd.f32 %v411_v49, %v410_v43  ;;  %429 = vadd.xlane.f32.xlu1 %v411_v49  ;;  %v409_v2 = vmul.f32 %v1204_v59, %v408_v63  ;;  %v502_v13 = vrot.slane %v1204_v59, %v1544_v8  ;;  %vm680_vm3 = vcmask 261120  }
 0x25e   :  { %v403_v54 = vrot.slane %v402_v48, 1  ;;  %v445_v11 = vsel %vm431_vm13, %v444_v4, 0.0 }
 0x25f   :  { %v413_v55 = vrot.slane %v412_v52, 4  ;;  %v447_v12 = vsel %vm66_vm4, %v445_v11, 0.0  ;;  %v503_v17 = vsel %vm431_vm13, %v502_v13, 0.0 }
 0x260   :  { %v404_v57 = vadd.f32 %v403_v54, %v402_v48  ;;  %v504_v8 = vsel %vm66_vm4, %v503_v17, 0.0  ;;  %v761_v17 = vld [vmem:[%s1745_s12 + $0x28] sm:$0xff] }
 0x261   :  { %v414_v58 = vadd.f32 %v413_v55, %v412_v52  ;;  %v498_v52 = vld [vmem:[#allocation3] sm:$0x3] }
 0x262   :  { %v405_v53 = vadd.f32 %v404_v57, %v395_v56 }
 0x263   :  { %v415_v60 = vrot.slane %v414_v58, 2 }
 0x264   :  { %407 = vst.msk [vmem:[#allocation6] sm:$0x1] %vm406_vm12, %v405_v53 }
 0x265   :  { %v416_v61 = vadd.f32 %v415_v60, %v414_v58 }
 0x267   :  { %v417_v0 = vrot.slane %v416_v61, 1 }
 0x269   :  { %v418_v3 = vadd.f32 %v417_v0, %v416_v61 }
 0x26b   :  { %v419_v5 = vadd.f32 %v418_v3, %v409_v2  ;;  %v1006_v6 = vld [vmem:[#allocation6] ss:$0 sm:$0xff] }
 0x26c   :  { %v558_v9 = vsel %vm431_vm13, %v1006_v6, 0.0  ;;  %v670_v6 = vld [vmem:[%s1743_s10 + $0x8] sm:$0xff] }
 0x26d   :  { %420 = vst.msk [vmem:[#allocation6 + $0x1] sm:$0x1] %vm406_vm12, %v419_v5  ;;  %v559_v10 = vsel %vm66_vm4, %v558_v9, 0.0  ;;  %1130 = vmatpush3.msra.mxu1 %v670_v6  ;;  %v669_v9 = vld [vmem:[%s1743_s10] sm:$0xff] }
 0x26e   :  { %560 = vadd.xlane.f32.xlu0 %v559_v10  ;;  %1131 = vmatprep.subr.mxu1 %v1295_v1  ;;  %v1008_v10 = vld [vmem:[%s1742_s9] ss:$0 sm:$0xff] }
 0x26f   :  { %1132 = vmatpush3.msra.mxu1 %v669_v9 }
 0x270   :  { %1136 = vmatprep.subr.mxu1 %v1295_v1 }
 0x272   :  { %448 = vadd.xlane.f32.xlu0 %v447_v12 }
 0x274   :  { %v1007_v14 = vld [vmem:[#allocation6 + $0x1] ss:$0 sm:$0xff] }
 0x275   :  { %v568_v15 = vsel %vm431_vm13, %v1007_v14, 0.0 }
 0x276   :  { %v569_v16 = vsel %vm66_vm4, %v568_v15, 0.0  ;;  %v763_v15 = vld [vmem:[%s1745_s12 + $0x38] sm:$0xff] }
 0x277   :  { %570 = vadd.xlane.f32.xlu1 %v569_v16  ;;  %v762_v16 = vld [vmem:[%s1745_s12 + $0x30] sm:$0xff] }
 0x27b   :  { %505 = vadd.xlane.f32.xlu1 %v504_v8  ;;  %v760_v8 = vld [vmem:[%s1745_s12 + $0x20] sm:$0xff] }
 0x2dc   :  { %v424_v21 = vpop.xlane.xlu1 %423 }
 0x2dd   :  { %v426_v22 = vpop.xlane.xlu0 %425  ;;  %v434_v23 = vmul.f32 %v432_v19, %v424_v21  ;;  %v756_v21 = vld [vmem:[%s1745_s12] sm:$0xff] }
 0x2de   :  { %v435_v24 = vmul.f32 %v433_v20, %v426_v22  ;;  %v845_v22 = vld [vmem:[%s1747_s14 + $0x18] sm:$0xff] }
 0x2e0   :  { %v436_v25 = vpack.c.bf16 %v435_v24, %v434_v23  ;;  %v844_v23 = vld [vmem:[%s1747_s14 + $0x10] sm:$0xff]  ;;  %v843_v24 = vld [vmem:[%s1747_s14 + $0x8] sm:$0xff]  ;;  %s1300_s14 = smov [#allocation6]  }
 0x2e1   :  { %s945_s27 = sshll.u32 %s1300_s14, 4  ;;  %s946_s27 = int_to_ptr.vmem [resolvable:$true] %s945_s27 }
 0x2e2   :  { %1095 = vmatpush3.bf16.msra.mxu0 %v436_v25  ;;  %v1010_v25 = vld [vmem:[%s1744_s11] ss:$0 sm:$0xff]  ;;  %s1301_s11 = smov [#allocation4]   ;;  %s1209_s28 = scalar_lea.vmem %s946_s27, 32 }
 0x2e3   :  { %1100 = vmatprep.subr.bf16.mxu0 %v1295_v1  ;;  %s935_s5 = sshll.u32 %s1301_s11, 4  ;;  %p1210_p0 = scmp.ne.s32.totalorder %s946_s27, %s1209_s28  ;;  %s936_s5 = int_to_ptr.vmem [resolvable:$true] %s935_s5 }
 0x2e4   :  { %p1214_p1 = scmp.lt.s32.totalorder %s946_s27, %s946_s27  ;;  %p1215_p2 = scmp.lt.s32.totalorder %s1209_s28, %s1209_s28 }
 0x2e5   :  { %1097 = vmatmul.mubr.msk.bf16.vlgmr.msra.gmra.mxu0 %vm451_vm2, %v100_v26  ;;  %v428_v27 = vpop.xlane.xlu0 %427 }
 0x2e6   :  { %v437_v28 = vmul.f32 %v432_v19, %v428_v27  ;;  %v430_v29 = vpop.xlane.xlu1 %429  ;;  %1102 = vmatprep.mubr.msk.bf16.mxu0 %vm1296_vm0, %v1295_v1  ;;  %v758_v19 = vld [vmem:[%s1745_s12 + $0x10] sm:$0xff]  ;;  %p1216_p3 = por %p1215_p2, %p1214_p1 }
 0x2e7   :  { %v438_v7 = vmul.f32 %v433_v20, %v430_v29  ;;  %v757_v20 = vld [vmem:[%s1745_s12 + $0x8] sm:$0xff]  ;;  %v1012_v29 = vld [vmem:[%s1746_s13] ss:$0 sm:$0xff] }
 0x2e8   :  { %p1217_p4 = pnand %p1216_p3, %p1210_p0 }
 0x2e9   :  { %v439_v62 = vpack.c.bf16 %v438_v7, %v437_v28 }
 0x2eb   :  { %1101 = vmatpush3.bf16.msra.mxu0 %v439_v62 }
 0x2ec   :  { %1106 = vmatprep.subr.mxu0 %v1295_v1 }
 0x2ee   :  { %1103 = vmatmul.mubr.msk.bf16.vlgmr.msra.gmra.mxu0 %vm451_vm2, %v100_v26 }
 0x2ef   :  { %1122 = vmatprep.mubr.msk.f32.mxu0 %vm1296_vm0, %v1295_v1  ;;  %1107 = vmatpush3.msra.mxu0 %v587_v30 }
 0x2f0   :  { %1108 = vmatprep.subr.mxu0 %v1295_v1 }
 0x2f1   :  { %1109 = vmatpush3.msra.mxu0 %v586_v31 }
 0x2f2   :  { %1110 = vmatprep.subr.mxu0 %v1295_v1 }
 0x2f3   :  { %1111 = vmatpush3.msra.mxu0 %v585_v32 }
 0x2f4   :  { %1112 = vmatprep.subr.mxu0 %v1295_v1 }
 0x2f5   :  { %1113 = vmatpush3.msra.mxu0 %v584_v33 }
 0x2f6   :  { %1114 = vmatprep.subr.mxu0 %v1295_v1 }
 0x2f7   :  { %1115 = vmatpush3.msra.mxu0 %v583_v34  ;;  %v561_v41 = vpop.xlane.xlu0 %560 }
 0x2f8   :  { %1116 = vmatprep.subr.mxu0 %v1295_v1  ;;  %v562_v47 = vmax.f32 %v561_v41, 1e-16 }
 0x2f9   :  { %1117 = vmatpush3.msra.mxu0 %v582_v35 }
 0x2fa   :  { %1118 = vmatprep.subr.mxu0 %v1295_v1  ;;  %1205 = vrcp.f32 %v562_v47 }
 0x2fb   :  { %1119 = vmatpush3.msra.mxu0 %v581_v36  ;;  %v449_v45 = vpop.xlane.xlu0 %448 }
 0x2fc   :  { %1120 = vmatprep.subr.mxu0 %v1295_v1  ;;  %v450_v46 = vmul.f32 %v449_v45, %v440_v44 }
 0x2fd   :  { %1121 = vmatpush3.msra.mxu0 %v580_v37 }
 0x2fe   :  { %1155 = vmatprep.subr.mxu0 %v1295_v1 }
 0x300   :  { %v571_v40 = vpop.xlane.xlu1 %570 }
 0x301   :  { %v572_v49 = vmax.f32 %v571_v40, 1e-16 }
 0x303   :  { %1207 = vrcp.f32 %v572_v49 }
 0x304   :  { %v506_v54 = vpop.xlane.xlu1 %505 }
 0x305   :  { %v507_v56 = vmul.f32 %v506_v54, %v498_v52 }
 0x307   :  { %v1206_v63 = vpop.eup %1205 }
 0x310   :  { %v1208_v0 = vpop.eup %1207 }
 0x3a5   :  { %v489_v43 = vpop.f32.mrf.mxu0 }
 0x3a6   :  { %v495_v48 = vadd.f32 %v489_v43, %v450_v46 }
 0x3a7   :  { %v1098_v50 = vpop.f32.mrf.mxu0 }
 0x3a8   :  { %497 = vst.msk [vmem:[#allocation2] sm:$0x3] %vm69_vm14, %v495_v48 }
 0x3a9   :  { %v492_v51 = vpop.f32.mrf.mxu0 }
 0x3ab   :  { %v1099_v55 = vpop.f32.mrf.mxu0 }
 0x3ae   :  { %v542_v57 = vpop.f32.mrf.mxu0 }
 0x3af   :  { %v548_v58 = vadd.f32 %v542_v57, %v507_v56  ;;  %v573_v59 = vld [vmem:[#allocation2] sm:$0x3] }
 0x3b0   :  { %v1104_v53 = vpop.f32.mrf.mxu0  ;;  %v575_v3 = vmul.f32 %v1206_v63, %v573_v59 }
 0x3b1   :  { %549 = vst.msk [vmem:[#allocation3] sm:$0x3] %vm69_vm14, %v548_v58 }
 0x3b2   :  { %v545_v60 = vpop.f32.mrf.mxu0 }
 0x3b4   :  { %v1105_v61 = vpop.f32.mrf.mxu0 }
 0x3b8   :  { %v576_v2 = vld [vmem:[#allocation3] sm:$0x3] }
 0x3b9   :  { %v578_v4 = vmul.f32 %v1208_v0, %v576_v2 }
 0x3bb   :  { %v579_v5 = vadd.f32 %v578_v4, %v575_v3 }
 0x3bd   :  { %1123 = vmatmul.mubr.msk.f32.vlgmr.msra.gmra.mxu0 %vm145_vm1, %v579_v5 }
 0x3be   :  { %1163 = vmatprep.mubr.msk.f32.mxu0 %vm1296_vm0, %v1295_v1  ;;  %1156 = vmatpush3.msra.mxu0 %v845_v22 }
 0x3bf   :  { %1157 = vmatprep.subr.mxu0 %v1295_v1 }
 0x3c0   :  { %1158 = vmatpush3.msra.mxu0 %v844_v23 }
 0x3c1   :  { %1159 = vmatprep.subr.mxu0 %v1295_v1 }
 0x3c2   :  { %1160 = vmatpush3.msra.mxu0 %v843_v24 }
 0x3c3   :  { %1161 = vmatprep.subr.mxu0 %v1295_v1 }
 0x3c4   :  { %1162 = vmatpush3.msra.mxu0 %v842_v42 }
 0x47d   :  { %v664_v11 = vpop.f32.mrf.mxu0 }
 0x47e   :  { %v665_v12 = vadd.f32 %v1008_v10, %v664_v11 }
 0x47f   :  { %v1124_v13 = vpop.f32.mrf.mxu0 }
 0x480   :  { %v668_v14 = vmax.f32 %v665_v12, 0.0 }
 0x482   :  { %1134 = vmatmul.mubr.msk.f32.vlgmr.msra.gmra.mxu1 %vm680_vm3, %v668_v14 }
 0x483   :  { %1137 = vmatpush3.msra.mxu1 %v763_v15  ;;  %1152 = vmatprep.mubr.msk.f32.mxu1 %vm1296_vm0, %v1295_v1  ;;  %vm754_vm0 = vcmask 58368  }
 0x484   :  { %1138 = vmatprep.subr.mxu1 %v1295_v1 }
 0x485   :  { %1139 = vmatpush3.msra.mxu1 %v762_v16 }
 0x486   :  { %1140 = vmatprep.subr.mxu1 %v1295_v1 }
 0x487   :  { %1141 = vmatpush3.msra.mxu1 %v761_v17 }
 0x488   :  { %1142 = vmatprep.subr.mxu1 %v1295_v1 }
 0x489   :  { %1143 = vmatpush3.msra.mxu1 %v760_v8 }
 0x48a   :  { %1144 = vmatprep.subr.mxu1 %v1295_v1 }
 0x48b   :  { %1145 = vmatpush3.msra.mxu1 %v759_v18 }
 0x48c   :  { %1146 = vmatprep.subr.mxu1 %v1295_v1 }
 0x48d   :  { %1147 = vmatpush3.msra.mxu1 %v758_v19 }
 0x48e   :  { %1148 = vmatprep.subr.mxu1 %v1295_v1 }
 0x48f   :  { %1149 = vmatpush3.msra.mxu1 %v757_v20 }
 0x490   :  { %1150 = vmatprep.subr.mxu1 %v1295_v1 }
 0x491   :  { %1151 = vmatpush3.msra.mxu1 %v756_v21 }
 0x492   :  { %1153 = vmatmul.mubr.msk.f32.vlgmr.msra.gmra.mxu1 %vm145_vm1, %v579_v5 }
 0x542   :  { %v750_v26 = vpop.f32.mrf.mxu1 }
 0x543   :  { %v751_v27 = vadd.f32 %v1010_v25, %v750_v26 }
 0x544   :  { %v1135_v28 = vpop.f32.mrf.mxu1 }
 0x545   :  { %755 = vst.msk [vmem:[#allocation8] sm:$0x3] %vm754_vm0, %v751_v27 }
 0x552   :  { %v837_v1 = vpop.f32.mrf.mxu1 }
 0x553   :  { %v838_v7 = vadd.f32 %v1012_v29, %v837_v1 }
 0x554   :  { %v1154_v62 = vpop.f32.mrf.mxu1 }
 0x555   :  { %v841_v30 = vmax.f32 %v838_v7, 0.0 }
 0x557   :  { %1164 = vmatmul.mubr.msk.f32.vlgmr.msra.gmra.mxu0 %vm680_vm3, %v841_v30 }
 0x558   :  { %1220 = shalt.err (!%p1217_p4)
}
 0x559   :  { %948 = dma.vmem_to_hbm [thread:$0]  %s946_s27, 32, %s1751_s18, [#allocation7]  }
 0x55a   :  { %s1229_s29 = scalar_lea.vmem %s936_s5, 32  ;;  %p1234_p6 = scmp.lt.s32.totalorder %s936_s5, %s936_s5 }
 0x55b   :  { %p1230_p5 = scmp.ne.s32.totalorder %s936_s5, %s1229_s29  ;;  %p1235_p7 = scmp.lt.s32.totalorder %s1229_s29, %s1229_s29 }
 0x55d   :  { %p1236_p8 = por %p1235_p7, %p1234_p6 }
 0x55f   :  { %p1237_p9 = pnand %p1236_p8, %p1230_p5 }
 0x561   :  { %1240 = shalt.err (!%p1237_p9)
}
 0x562   :  { %938 = dma.vmem_to_hbm [thread:$0]  %s936_s5, 32, %s1750_s17, [#allocation5]  }
 0x563   :  { %s1302_s16 = smov [#allocation8]  }
 0x564   :  { %s955_s0 = sshll.u32 %s1302_s16, 4  ;;  %s956_s0 = int_to_ptr.vmem [resolvable:$true] %s955_s0 }
 0x565   :  { %s1249_s21 = scalar_lea.vmem %s956_s0, 32  ;;  %p1254_p11 = scmp.lt.s32.totalorder %s956_s0, %s956_s0 }
 0x566   :  { %p1250_p10 = scmp.ne.s32.totalorder %s956_s0, %s1249_s21  ;;  %p1255_p12 = scmp.lt.s32.totalorder %s1249_s21, %s1249_s21 }
 0x568   :  { %p1256_p13 = por %p1255_p12, %p1254_p11 }
 0x56a   :  { %p1257_p0 = pnand %p1256_p13, %p1250_p10 }
 0x56c   :  { %1260 = shalt.err (!%p1257_p0)
}
 0x56d   :  { %958 = dma.vmem_to_hbm [thread:$0]  %s956_s0, 32, %s1752_s19, [#allocation7]   ;;  %v1014_v31 = vld [vmem:[%s1748_s15] ss:$0 sm:$0xff] }
 0x56e   :  { %s1303_s24 = smov [#allocation9]  }
 0x56f   :  { %s965_s17 = sshll.u32 %s1303_s24, 4  ;;  %s966_s17 = int_to_ptr.vmem [resolvable:$true] %s965_s17 }
 0x570   :  { %s1269_s23 = scalar_lea.vmem %s966_s17, 32  ;;  %p1274_p2 = scmp.lt.s32.totalorder %s966_s17, %s966_s17 }
 0x571   :  { %p1270_p1 = scmp.ne.s32.totalorder %s966_s17, %s1269_s23  ;;  %p1275_p3 = scmp.lt.s32.totalorder %s1269_s23, %s1269_s23 }
 0x573   :  { %p1276_p4 = por %p1275_p3, %p1274_p2 }
 0x575   :  { %p1277_p5 = pnand %p1276_p4, %p1270_p1 }
 0x617   :  { %v922_v32 = vpop.f32.mrf.mxu0 }
 0x618   :  { %v923_v33 = vadd.f32 %v1014_v31, %v922_v32 }
 0x619   :  { %v1165_v34 = vpop.f32.mrf.mxu0 }
 0x61a   :  { %926 = vst.msk [vmem:[#allocation9] sm:$0x3] %vm754_vm0, %v923_v33 }
 0x61b   :  { %1280 = shalt.err (!%p1277_p5)
}
 0x61c   :  { %968 = dma.vmem_to_hbm [thread:$0]  %s966_s17, 32, %s1753_s20, [#allocation10]  }
 0x61d   :  { %1289 = dma.done.wait [#allocation5], 32  }
 0x61e   :  { %1290 = vsyncadd [#allocation5], 4294967264 }
 0x61f   :  { %1291 = dma.done.wait [#allocation7], 64  }
 0x620   :  { %1292 = vsyncadd [#allocation7], 4294967232 }
 0x621   :  { %1293 = dma.done.wait [#allocation10], 32  }
 0x622   :  { %1294 = vsyncadd [#allocation10], 4294967264 }
 0x623   :  { %983 = vsyncpa [#allocation5], 1 }
 0x624   :  { %984 = vsyncpa [#allocation7], 1 }
 0x625   :  { %985 = vsyncpa [#allocation10], 1 }

</bundles_post_ra>
